<compile_context>
chip_gen: v7x
topology: tpu7x:2x2x1
jax: 0.10.0
libtpu: 0.0.40
codegen_flags: <defaults>
</compile_context>

<pallas_src>
import functools

import jax
import jax.numpy as jnp
from jax.experimental import pallas as pl


LANE = 128  # TPU lane width; all "channel"-like dims are zero-padded to this.


def _full_spec(shape):
    # Whole-array block (gridless kernel): index_map always returns the origin block.
    return pl.BlockSpec(shape, lambda *_: (0,) * len(shape))


# ----------------------------------------------------------------------------
# Fused Pallas kernel: whole Alignment forward in one invocation.
# ----------------------------------------------------------------------------
def _alignment_fused_kernel(patches_ref, wconv_ref, bconv_ref,
                            wproj_ref, bproj_ref,
                            states_ref, w1_ref, b1_ref, w2_ref, b2_ref,
                            frame_ref, h1_ref, h2_ref,
                            *, batch, hw):
    f32 = jnp.float32

    # ---- frame encoder ------------------------------------------------------
    # conv3x3 as ONE im2col GEMM: (B*H*W, 9*Cin) @ (9*Cin, 128) -> (B*H*W, 128)
    acc = jnp.dot(patches_ref[...], wconv_ref[...], preferred_element_type=f32)
    acc = jnp.maximum(acc + bconv_ref[...], 0.0)                 # bias + ReLU

    # Global average pool on the MXU: per-image averaging matrix @ acc.
    rows = jax.lax.broadcasted_iota(jnp.int32, (batch, batch * hw), 0)
    cols = jax.lax.broadcasted_iota(jnp.int32, (batch, batch * hw), 1)
    in_img = (cols >= rows * hw) & (cols < (rows + 1) * hw)
    pool = jnp.where(in_img, 1.0 / hw, 0.0)                      # (B, B*H*W) f32
    pooled = jnp.dot(pool, acc, preferred_element_type=f32)      # (B, 128)

    # Linear projection head (no activation).
    frame = jnp.dot(pooled, wproj_ref[...], preferred_element_type=f32) + bproj_ref[...]
    frame_ref[...] = frame.astype(frame_ref.dtype)

    # ---- frozen state encoder: 2-layer MLP, get_features() -> [h1, h2] ------
    h1 = jnp.maximum(
        jnp.dot(states_ref[...], w1_ref[...], preferred_element_type=f32) + b1_ref[...], 0.0)
    h2 = jnp.maximum(
        jnp.dot(h1, w2_ref[...], preferred_element_type=f32) + b2_ref[...], 0.0)
    h1_ref[...] = h1.astype(h1_ref.dtype)
    h2_ref[...] = h2.astype(h2_ref.dtype)


# ----------------------------------------------------------------------------
# Wrapper-side preparation (cheap, fuses into one XLA copy / weight-only ops)
# ----------------------------------------------------------------------------
def _extract_patches(frames_nchw):
    """NCHW frames -> (B*H*W, 9*Cin) im2col patch matrix for a 3x3, pad=1 conv.

    This is the only wrapper-side data-movement on the frames and it subsumes the
    NCHW -> channels-last layout change the kernel needs anyway; XLA fuses the pad,
    slices, stack and transpose into a single copy.
    """
    B, C, H, W = frames_nchw.shape
    xp = jnp.pad(frames_nchw, ((0, 0), (0, 0), (1, 1), (1, 1)))
    taps = [xp[:, :, kh:kh + H, kw:kw + W] for kh in range(3) for kw in range(3)]
    pat = jnp.stack(taps, axis=0)            # (9, B, C, H, W)
    pat = pat.transpose(1, 3, 4, 0, 2)       # (B, H, W, 9, C)
    return pat.reshape(B * H * W, 9 * C)


def _pad_lanes(x, lane=LANE):
    """Zero-pad the last dim up to `lane` (lane-dense layout for the kernel)."""
    pad = lane - x.shape[-1]
    if pad <= 0:
        return x
    widths = [(0, 0)] * (x.ndim - 1) + [(0, pad)]
    return jnp.pad(x, widths)


# ----------------------------------------------------------------------------
# Synthetic encoders (deterministic parameters) + forward
# ----------------------------------------------------------------------------
def init_params(key, c_in=3, c_mid=16, embed_dim=32, state_dim=8, hidden=32):
    ks = jax.random.split(key, 8)
    return {
        # frame encoder
        "conv_w": 0.1 * jax.random.normal(ks[0], (3, 3, c_in, c_mid), jnp.float32),
        "conv_b": 0.1 * jax.random.normal(ks[1], (c_mid,), jnp.float32),
        "proj_w": 0.1 * jax.random.normal(ks[2], (c_mid, embed_dim), jnp.float32),
        "proj_b": 0.1 * jax.random.normal(ks[3], (embed_dim,), jnp.float32),
        # frozen state encoder (stop_gradient applied on its features)
        "mlp_w1": 0.1 * jax.random.normal(ks[4], (state_dim, hidden), jnp.float32),
        "mlp_b1": 0.1 * jax.random.normal(ks[5], (hidden,), jnp.float32),
        "mlp_w2": 0.1 * jax.random.normal(ks[6], (hidden, embed_dim), jnp.float32),
        "mlp_b2": 0.1 * jax.random.normal(ks[7], (embed_dim,), jnp.float32),
    }


def alignment_forward(params, frames, states, state_feature_layer=-1):
    B, C, H, W = frames.shape
    c_mid = params["conv_w"].shape[3]
    embed = params["proj_w"].shape[1]
    hidden = params["mlp_w1"].shape[1]
    hw = H * W
    assert c_mid <= LANE and embed <= LANE and hidden <= LANE

    # Frames: one fused im2col copy (includes the mandatory layout change + halo pad).
    patches = _extract_patches(frames).astype(jnp.float32)              # (B*H*W, 9*C)

    # Weights: reshape conv to (9*Cin, Cmid) and zero-pad every output dim to 128.
    # (In a real trainer this would be precomputed once; it is weight-only and tiny.)
    wconv = _pad_lanes(params["conv_w"].reshape(9 * C, c_mid))           # (27, 128)
    bconv = _pad_lanes(params["conv_b"].reshape(1, c_mid))               # (1, 128)
    wproj = jnp.pad(params["proj_w"], ((0, LANE - c_mid), (0, LANE - embed)))
    bproj = _pad_lanes(params["proj_b"].reshape(1, embed))
    w1 = _pad_lanes(params["mlp_w1"])                                    # (state_dim, 128)
    b1 = _pad_lanes(params["mlp_b1"].reshape(1, hidden))
    w2 = jnp.pad(params["mlp_w2"], ((0, LANE - hidden), (0, LANE - embed)))
    b2 = _pad_lanes(params["mlp_b2"].reshape(1, embed))

    args = (patches, wconv, bconv, wproj, bproj,
            states.astype(jnp.float32), w1, b1, w2, b2)

    out_shapes = (jax.ShapeDtypeStruct((B, LANE), jnp.float32),   # frame features (padded)
                  jax.ShapeDtypeStruct((B, LANE), jnp.float32),   # state MLP layer 1 (padded)
                  jax.ShapeDtypeStruct((B, LANE), jnp.float32))   # state MLP layer 2 (padded)

    frame_pad, h1_pad, h2_pad = pl.pallas_call(
        functools.partial(_alignment_fused_kernel, batch=B, hw=hw),
        out_shape=out_shapes,
        in_specs=[_full_spec(a.shape) for a in args],
        out_specs=tuple(_full_spec(s.shape) for s in out_shapes),
    )(*args)

    frame_features = frame_pad[:, :embed]
    # state_encoder.get_features(...) -> per-layer features; encoder is frozen.
    feats = [h1_pad[:, :hidden], h2_pad[:, :embed]]
    state_features = jax.lax.stop_gradient(feats[state_feature_layer])
    return frame_features, state_features


# ----------------------------------------------------------------------------
if __name__ == "__main__":
    key = jax.random.PRNGKey(0)
    k_param, k_frames, k_states = jax.random.split(key, 3)

    B, C, H, W = 2, 3, 16, 16
    STATE_DIM = 8

    params = init_params(k_param, c_in=C, c_mid=16, embed_dim=32,
                         state_dim=STATE_DIM, hidden=32)

    frames = jax.random.normal(k_frames, (B, C, H, W), jnp.float32)   # NCHW
    states = jax.random.normal(k_states, (B, STATE_DIM), jnp.float32)

    frame_feats, state_feats = jax.jit(alignment_forward)(params, frames, states)
    jax.block_until_ready((frame_feats, state_feats))

    assert frame_feats.shape == (B, 32) and state_feats.shape == (B, 32)
    print("KERNEL_OK")
</pallas_src>

<mosaic_0001>
module attributes {stable_mosaic.version = 11 : i64} {
  func.func @_alignment_fused_kernel(%arg0: memref<512x27xf32, #tpu.memory_space<vmem>>, %arg1: memref<27x128xf32, #tpu.memory_space<vmem>>, %arg2: memref<1x128xf32, #tpu.memory_space<vmem>>, %arg3: memref<128x128xf32, #tpu.memory_space<vmem>>, %arg4: memref<1x128xf32, #tpu.memory_space<vmem>>, %arg5: memref<2x8xf32, #tpu.memory_space<vmem>>, %arg6: memref<8x128xf32, #tpu.memory_space<vmem>>, %arg7: memref<1x128xf32, #tpu.memory_space<vmem>>, %arg8: memref<128x128xf32, #tpu.memory_space<vmem>>, %arg9: memref<1x128xf32, #tpu.memory_space<vmem>>, %arg10: memref<2x128xf32, #tpu.memory_space<vmem>>, %arg11: memref<2x128xf32, #tpu.memory_space<vmem>>, %arg12: memref<2x128xf32, #tpu.memory_space<vmem>>) attributes {dimension_semantics = [], scalar_prefetch = 0 : i64, scratch_operands = 0 : i64, tpu.core_type = #tpu.core_type<tc>} {
    %c0 = arith.constant 0 : index
    %c0_0 = arith.constant 0 : index
    %0 = vector.load %arg0[%c0, %c0_0] : memref<512x27xf32, #tpu.memory_space<vmem>>, vector<512x27xf32>
    %c0_1 = arith.constant 0 : index
    %c0_2 = arith.constant 0 : index
    %1 = vector.load %arg1[%c0_1, %c0_2] : memref<27x128xf32, #tpu.memory_space<vmem>>, vector<27x128xf32>
    %cst = arith.constant dense<0.000000e+00> : vector<512x128xf32>
    %2 = tpu.matmul %0, %1, %cst {dimension_numbers = #tpu.dot_dimension_numbers<[1], [0], [0], [1], [0, 0, 1, 1], [], []>} : vector<512x27xf32>, vector<27x128xf32>, vector<512x128xf32> -> vector<512x128xf32>
    %c0_3 = arith.constant 0 : index
    %c0_4 = arith.constant 0 : index
    %3 = vector.load %arg2[%c0_3, %c0_4] : memref<1x128xf32, #tpu.memory_space<vmem>>, vector<1x128xf32>
    %4 = vector.broadcast %3 : vector<1x128xf32> to vector<512x128xf32>
    %5 = arith.addf %2, %4 : vector<512x128xf32>
    %cst_5 = arith.constant 0.000000e+00 : f32
    %6 = vector.broadcast %cst_5 : f32 to vector<512x128xf32>
    %7 = arith.maximumf %5, %6 : vector<512x128xf32>
    %8 = tpu.iota {dimensions = array<i32: 0>} : vector<2x512xi32>
    %9 = tpu.iota {dimensions = array<i32: 1>} : vector<2x512xi32>
    %c256_i32 = arith.constant 256 : i32
    %10 = vector.broadcast %c256_i32 : i32 to vector<2x512xi32>
    %11 = arith.muli %8, %10 : vector<2x512xi32>
    %12 = arith.cmpi sge, %9, %11 : vector<2x512xi32>
    %c1_i32 = arith.constant 1 : i32
    %13 = vector.broadcast %c1_i32 : i32 to vector<2x512xi32>
    %14 = arith.addi %8, %13 : vector<2x512xi32>
    %c256_i32_6 = arith.constant 256 : i32
    %15 = vector.broadcast %c256_i32_6 : i32 to vector<2x512xi32>
    %16 = arith.muli %14, %15 : vector<2x512xi32>
    %17 = arith.cmpi slt, %9, %16 : vector<2x512xi32>
    %18 = arith.andi %12, %17 : vector<2x512xi1>
    %cst_7 = arith.constant 3.906250e-03 : f32
    %cst_8 = arith.constant 0.000000e+00 : f32
    %19 = vector.broadcast %cst_7 : f32 to vector<2x512xf32>
    %20 = vector.broadcast %cst_8 : f32 to vector<2x512xf32>
    %21 = arith.select %18, %19, %20 : vector<2x512xi1>, vector<2x512xf32>
    %cst_9 = arith.constant dense<0.000000e+00> : vector<2x128xf32>
    %22 = tpu.matmul %21, %7, %cst_9 {dimension_numbers = #tpu.dot_dimension_numbers<[1], [0], [0], [1], [0, 0, 1, 1], [], []>} : vector<2x512xf32>, vector<512x128xf32>, vector<2x128xf32> -> vector<2x128xf32>
    %c0_10 = arith.constant 0 : index
    %c0_11 = arith.constant 0 : index
    %23 = vector.load %arg3[%c0_10, %c0_11] : memref<128x128xf32, #tpu.memory_space<vmem>>, vector<128x128xf32>
    %cst_12 = arith.constant dense<0.000000e+00> : vector<2x128xf32>
    %24 = tpu.matmul %22, %23, %cst_12 {dimension_numbers = #tpu.dot_dimension_numbers<[1], [0], [0], [1], [0, 0, 1, 1], [], []>} : vector<2x128xf32>, vector<128x128xf32>, vector<2x128xf32> -> vector<2x128xf32>
    %c0_13 = arith.constant 0 : index
    %c0_14 = arith.constant 0 : index
    %25 = vector.load %arg4[%c0_13, %c0_14] : memref<1x128xf32, #tpu.memory_space<vmem>>, vector<1x128xf32>
    %26 = vector.broadcast %25 : vector<1x128xf32> to vector<2x128xf32>
    %27 = arith.addf %24, %26 : vector<2x128xf32>
    %c0_15 = arith.constant 0 : index
    %c0_16 = arith.constant 0 : index
    %28 = vector.load %arg10[%c0_15, %c0_16] : memref<2x128xf32, #tpu.memory_space<vmem>>, vector<2x128xf32>
    tpu.vector_store %arg10[%c0_15, %c0_16], %27 {strides = array<i32>} : memref<2x128xf32, #tpu.memory_space<vmem>>, vector<2x128xf32>,
    %c0_17 = arith.constant 0 : index
    %c0_18 = arith.constant 0 : index
    %29 = vector.load %arg5[%c0_17, %c0_18] : memref<2x8xf32, #tpu.memory_space<vmem>>, vector<2x8xf32>
    %c0_19 = arith.constant 0 : index
    %c0_20 = arith.constant 0 : index
    %30 = vector.load %arg6[%c0_19, %c0_20] : memref<8x128xf32, #tpu.memory_space<vmem>>, vector<8x128xf32>
    %cst_21 = arith.constant dense<0.000000e+00> : vector<2x128xf32>
    %31 = tpu.matmul %29, %30, %cst_21 {dimension_numbers = #tpu.dot_dimension_numbers<[1], [0], [0], [1], [0, 0, 1, 1], [], []>} : vector<2x8xf32>, vector<8x128xf32>, vector<2x128xf32> -> vector<2x128xf32>
    %c0_22 = arith.constant 0 : index
    %c0_23 = arith.constant 0 : index
    %32 = vector.load %arg7[%c0_22, %c0_23] : memref<1x128xf32, #tpu.memory_space<vmem>>, vector<1x128xf32>
    %33 = vector.broadcast %32 : vector<1x128xf32> to vector<2x128xf32>
    %34 = arith.addf %31, %33 : vector<2x128xf32>
    %cst_24 = arith.constant 0.000000e+00 : f32
    %35 = vector.broadcast %cst_24 : f32 to vector<2x128xf32>
    %36 = arith.maximumf %34, %35 : vector<2x128xf32>
    %c0_25 = arith.constant 0 : index
    %c0_26 = arith.constant 0 : index
    %37 = vector.load %arg8[%c0_25, %c0_26] : memref<128x128xf32, #tpu.memory_space<vmem>>, vector<128x128xf32>
    %cst_27 = arith.constant dense<0.000000e+00> : vector<2x128xf32>
    %38 = tpu.matmul %36, %37, %cst_27 {dimension_numbers = #tpu.dot_dimension_numbers<[1], [0], [0], [1], [0, 0, 1, 1], [], []>} : vector<2x128xf32>, vector<128x128xf32>, vector<2x128xf32> -> vector<2x128xf32>
    %c0_28 = arith.constant 0 : index
    %c0_29 = arith.constant 0 : index
    %39 = vector.load %arg9[%c0_28, %c0_29] : memref<1x128xf32, #tpu.memory_space<vmem>>, vector<1x128xf32>
    %40 = vector.broadcast %39 : vector<1x128xf32> to vector<2x128xf32>
    %41 = arith.addf %38, %40 : vector<2x128xf32>
    %cst_30 = arith.constant 0.000000e+00 : f32
    %42 = vector.broadcast %cst_30 : f32 to vector<2x128xf32>
    %43 = arith.maximumf %41, %42 : vector<2x128xf32>
    %c0_31 = arith.constant 0 : index
    %c0_32 = arith.constant 0 : index
    %44 = vector.load %arg11[%c0_31, %c0_32] : memref<2x128xf32, #tpu.memory_space<vmem>>, vector<2x128xf32>
    tpu.vector_store %arg11[%c0_31, %c0_32], %36 {strides = array<i32>} : memref<2x128xf32, #tpu.memory_space<vmem>>, vector<2x128xf32>,
    %c0_33 = arith.constant 0 : index
    %c0_34 = arith.constant 0 : index
    %45 = vector.load %arg12[%c0_33, %c0_34] : memref<2x128xf32, #tpu.memory_space<vmem>>, vector<2x128xf32>
    tpu.vector_store %arg12[%c0_33, %c0_34], %43 {strides = array<i32>} : memref<2x128xf32, #tpu.memory_space<vmem>>, vector<2x128xf32>,
    return
  }
}

</mosaic_0001>

<bundles_post_ra>
// kernel: alignment_forward.1
= control target key start
LH: loop header
LB: loop body
LE: loop exit
PB: predicated region body
PF: predicated region fallthrough
CT: control target
= control target key end

     0   :  { %18 = vsyncpa [#allocation3], 0  ;;  %vm308_vm0 = vcmask 1042432   ;;  %vm115_vm1 = vcmask 220160   ;;  %vm1869_vm2 = vmmov 1   ;;  %s2515_s0 = inlined_call_operand.vmem [shape: f32[512,27], index: 0, kind: input, shape index: {}]   ;;  %s2516_s1 = inlined_call_operand.vmem [shape: f32[27,128], index: 1, kind: input, shape index: {}]   ;;  %s2517_s2 = inlined_call_operand.vmem [shape: f32[1,128], index: 2, kind: input, shape index: {}]   ;;  %s2518_s3 = inlined_call_operand.vmem [shape: f32[128,128], index: 3, kind: input, shape index: {}]   ;;  %s2519_s4 = inlined_call_operand.vmem [shape: f32[1,128], index: 4, kind: input, shape index: {}]   ;;  %s2520_s5 = inlined_call_operand.vmem [shape: f32[2,8], index: 5, kind: input, shape index: {}]   ;;  %s2521_s6 = inlined_call_operand.vmem [shape: f32[8,128], index: 6, kind: input, shape index: {}]   ;;  %s2522_s7 = inlined_call_operand.vmem [shape: f32[1,128], index: 7, kind: input, shape index: {}]   ;;  %s2523_s8 = inlined_call_operand.vmem [shape: f32[128,128], index: 8, kind: input, shape index: {}]   ;;  %s2524_s9 = inlined_call_operand.vmem [shape: f32[1,128], index: 9, kind: input, shape index: {}]   ;;  %s2525_s10 = inlined_call_operand.hbm [shape: f32[2,128], index: 10, kind: output, shape index: {0}]   ;;  %s2526_s11 = inlined_call_operand.hbm [shape: f32[2,128], index: 11, kind: output, shape index: {1}]   ;;  %s2527_s12 = inlined_call_operand.hbm [shape: f32[2,128], index: 12, kind: output, shape index: {2}]  }
   0x1   :  { %v104_v0 = vld [vmem:[%s2516_s1] sm:$0xff]  ;;  %v105_v1 = vld [vmem:[%s2516_s1 + $0x8] sm:$0xff]  ;;  %v106_v2 = vld [vmem:[%s2516_s1 + $0x10] sm:$0xff] }
   0x2   :  { %v1669_v3 = vpack.c.bf16 %v105_v1, %v104_v0  ;;  %v107_v4 = vld [vmem:[%s2516_s1 + $0x18] sm:$0x7]  ;;  %v40_v5 = vld [vmem:[%s2515_s0] sm:$0xff]  ;;  %vm1674_vm3 = vmpackc.low %vm308_vm0, %vm1869_vm2 }
   0x3   :  { %v1673_v6 = vpack.c.bf16 %v107_v4, %v106_v2  ;;  %1498 = vmatprep.mubr.msk.f32.mxu0 %vm115_vm1, %v40_v5  ;;  %v41_v7 = vld [vmem:[%s2515_s0 + $0x8] sm:$0xff]  ;;  %v42_v8 = vld [vmem:[%s2515_s0 + $0x10] sm:$0xff]  ;;  %v43_v9 = vld [vmem:[%s2515_s0 + $0x18] sm:$0xff] }
   0x4   :  { %1670 = vmatprep.subr.bf16.mxu0 %v1669_v3  ;;  %v44_v10 = vld [vmem:[%s2515_s0 + $0x20] sm:$0xff]  ;;  %v45_v11 = vld [vmem:[%s2515_s0 + $0x28] sm:$0xff]  ;;  %v46_v12 = vld [vmem:[%s2515_s0 + $0x30] sm:$0xff] }
   0x5   :  { %1672 = vmatpush3.bf16.msra.mxu0 %v1669_v3  ;;  %v47_v13 = vld [vmem:[%s2515_s0 + $0x38] sm:$0xff]  ;;  %v48_v14 = vld [vmem:[%s2515_s0 + $0x40] sm:$0xff] }
   0x6   :  { %1675 = vmatprep.subr.msk.bf16.mxu0 %vm1674_vm3, %v1673_v6 }
   0x9   :  { %1678 = vmatpush3.bf16.msk.msra.mxu0 %vm1674_vm3, %v1673_v6 }
   0xc   :  { %1499 = vmatmul.mubr.msk.f32.vlgmr.msra.gmra.mrb[0].mxu0 %vm115_vm1, %v41_v7 }
   0xd   :  { %1501 = vmatprep.mubr.msk.f32.mxu0 %vm115_vm1, %v42_v8 }
  0x10   :  { %1502 = vmatmul.mubr.msk.f32.gmra.mrb[2].mxu0 %vm115_vm1, %v43_v9 }
  0x11   :  { %1504 = vmatprep.mubr.msk.f32.mxu0 %vm115_vm1, %v44_v10 }
  0x14   :  { %1505 = vmatmul.mubr.msk.f32.gmra.mrb[4].mxu0 %vm115_vm1, %v45_v11 }
  0x15   :  { %1507 = vmatprep.mubr.msk.f32.mxu0 %vm115_vm1, %v46_v12 }
  0x18   :  { %1508 = vmatmul.mubr.msk.f32.gmra.mrb[6].mxu0 %vm115_vm1, %v47_v13 }
  0x19   :  { %19 = vsyncpa [#allocation5], 0  ;;  %1510 = vmatprep.mubr.msk.f32.mxu0 %vm115_vm1, %v48_v14  ;;  %v49_v15 = vld [vmem:[%s2515_s0 + $0x48] sm:$0xff]  ;;  %v50_v16 = vld [vmem:[%s2515_s0 + $0x50] sm:$0xff]  ;;  %v761_v6 = vlaneseq  ;;  %v1870_v13 = vmov 0.00390625   ;;  %vm1872_vm0 = vmmov 0  }
  0x1a   :  { %v51_v17 = vld [vmem:[%s2515_s0 + $0x58] sm:$0xff]  ;;  %v52_v18 = vld [vmem:[%s2515_s0 + $0x60] sm:$0xff]  ;;  %v53_v19 = vld [vmem:[%s2515_s0 + $0x68] sm:$0xff]  ;;  %s1875_s28 = smov [#allocation2]  }
  0x1b   :  { %v54_v20 = vld [vmem:[%s2515_s0 + $0x70] sm:$0xff]  ;;  %v55_v21 = vld [vmem:[%s2515_s0 + $0x78] sm:$0xff]  ;;  %v56_v22 = vld [vmem:[%s2515_s0 + $0x80] sm:$0xff]  ;;  %v762_v7 = vshrl.u32 %v761_v6, 7  ;;  %v764_v8 = vand.u32 127, %v761_v6  ;;  %s1207_s29 = sshll.u32 %s1875_s28, 4  ;;  %s1208_s29 = int_to_ptr.vmem [resolvable:$true] %s1207_s29 }
  0x1c   :  { %1511 = vmatmul.mubr.msk.f32.gmra.mrb[8].mxu0 %vm115_vm1, %v49_v15  ;;  %v57_v23 = vld [vmem:[%s2515_s0 + $0x88] sm:$0xff]  ;;  %v58_v24 = vld [vmem:[%s2515_s0 + $0x90] sm:$0xff]  ;;  %v59_v25 = vld [vmem:[%s2515_s0 + $0x98] sm:$0xff] }
  0x1d   :  { %1513 = vmatprep.mubr.msk.f32.mxu0 %vm115_vm1, %v50_v16  ;;  %v60_v26 = vld [vmem:[%s2515_s0 + $0xa0] sm:$0xff]  ;;  %v61_v27 = vld [vmem:[%s2515_s0 + $0xa8] sm:$0xff]  ;;  %v62_v28 = vld [vmem:[%s2515_s0 + $0xb0] sm:$0xff]  ;;  %v773_v9 = vadd.s32 1, %v762_v7  ;;  %v765_v10 = vadd.s32 128, %v764_v8  ;;  %v768_v11 = vmul.u32 256, %v762_v7 }
  0x1e   :  { %v63_v29 = vld [vmem:[%s2515_s0 + $0xb8] sm:$0xff]  ;;  %v64_v30 = vld [vmem:[%s2515_s0 + $0xc0] sm:$0xff]  ;;  %v65_v31 = vld [vmem:[%s2515_s0 + $0xc8] sm:$0xff] }
  0x1f   :  { %v66_v32 = vld [vmem:[%s2515_s0 + $0xd0] sm:$0xff]  ;;  %v67_v33 = vld [vmem:[%s2515_s0 + $0xd8] sm:$0xff]  ;;  %v68_v34 = vld [vmem:[%s2515_s0 + $0xe0] sm:$0xff]  ;;  %v774_v12 = vmul.u32 256, %v773_v9  ;;  %vm770_vm4 = vcmp.ge.s32.totalorder %v765_v10, %v768_v11  ;;  %vm769_vm7 = vcmp.ge.s32.totalorder %v764_v8, %v768_v11 }
  0x20   :  { %1514 = vmatmul.mubr.msk.f32.gmra.mrb[10].mxu0 %vm115_vm1, %v51_v17  ;;  %v69_v35 = vld [vmem:[%s2515_s0 + $0xe8] sm:$0xff]  ;;  %v70_v36 = vld [vmem:[%s2515_s0 + $0xf0] sm:$0xff]  ;;  %v71_v37 = vld [vmem:[%s2515_s0 + $0xf8] sm:$0xff] }
  0x21   :  { %1516 = vmatprep.mubr.msk.f32.mxu0 %vm115_vm1, %v52_v18  ;;  %v72_v38 = vld [vmem:[%s2515_s0 + $0x100] sm:$0xff]  ;;  %v73_v39 = vld [vmem:[%s2515_s0 + $0x108] sm:$0xff]  ;;  %v74_v40 = vld [vmem:[%s2515_s0 + $0x110] sm:$0xff]  ;;  %vm776_vm5 = vcmp.lt.s32.totalorder %v765_v10, %v774_v12  ;;  %vm775_vm8 = vcmp.lt.s32.totalorder %v764_v8, %v774_v12 }
  0x22   :  { %v75_v41 = vld [vmem:[%s2515_s0 + $0x118] sm:$0xff]  ;;  %v76_v42 = vld [vmem:[%s2515_s0 + $0x120] sm:$0xff]  ;;  %v77_v43 = vld [vmem:[%s2515_s0 + $0x128] sm:$0xff] }
  0x23   :  { %v78_v44 = vld [vmem:[%s2515_s0 + $0x130] sm:$0xff]  ;;  %v79_v45 = vld [vmem:[%s2515_s0 + $0x138] sm:$0xff]  ;;  %v80_v46 = vld [vmem:[%s2515_s0 + $0x140] sm:$0xff] }
  0x24   :  { %1517 = vmatmul.mubr.msk.f32.gmra.mrb[12].mxu0 %vm115_vm1, %v53_v19  ;;  %v81_v47 = vld [vmem:[%s2515_s0 + $0x148] sm:$0xff]  ;;  %v82_v48 = vld [vmem:[%s2515_s0 + $0x150] sm:$0xff]  ;;  %v83_v49 = vld [vmem:[%s2515_s0 + $0x158] sm:$0xff] }
  0x25   :  { %1519 = vmatprep.mubr.msk.f32.mxu0 %vm115_vm1, %v54_v20  ;;  %v84_v50 = vld [vmem:[%s2515_s0 + $0x160] sm:$0xff]  ;;  %v85_v51 = vld [vmem:[%s2515_s0 + $0x168] sm:$0xff]  ;;  %v86_v52 = vld [vmem:[%s2515_s0 + $0x170] sm:$0xff] }
  0x26   :  { %v87_v53 = vld [vmem:[%s2515_s0 + $0x178] sm:$0xff]  ;;  %v88_v54 = vld [vmem:[%s2515_s0 + $0x180] sm:$0xff]  ;;  %v89_v55 = vld [vmem:[%s2515_s0 + $0x188] sm:$0xff] }
  0x27   :  { %v90_v56 = vld [vmem:[%s2515_s0 + $0x190] sm:$0xff]  ;;  %v91_v57 = vld [vmem:[%s2515_s0 + $0x198] sm:$0xff]  ;;  %v92_v58 = vld [vmem:[%s2515_s0 + $0x1a0] sm:$0xff] }
  0x28   :  { %1520 = vmatmul.mubr.msk.f32.gmra.mrb[14].mxu0 %vm115_vm1, %v55_v21  ;;  %v93_v59 = vld [vmem:[%s2515_s0 + $0x1a8] sm:$0xff]  ;;  %v94_v60 = vld [vmem:[%s2515_s0 + $0x1b0] sm:$0xff]  ;;  %v95_v61 = vld [vmem:[%s2515_s0 + $0x1b8] sm:$0xff]  ;;  %v767_v21 = vadd.s32 384, %v764_v8 }
  0x29   :  { %1522 = vmatprep.mubr.msk.f32.mxu0 %vm115_vm1, %v56_v22  ;;  %v96_v62 = vld [vmem:[%s2515_s0 + $0x1c0] sm:$0xff]  ;;  %v97_v63 = vld [vmem:[%s2515_s0 + $0x1c8] sm:$0xff]  ;;  %v98_v0 = vld [vmem:[%s2515_s0 + $0x1d0] sm:$0xff] }
  0x2a   :  { %v99_v1 = vld [vmem:[%s2515_s0 + $0x1d8] sm:$0xff]  ;;  %v100_v2 = vld [vmem:[%s2515_s0 + $0x1e0] sm:$0xff]  ;;  %v101_v3 = vld [vmem:[%s2515_s0 + $0x1e8] sm:$0xff]  ;;  %vm772_vm10 = vcmp.ge.s32.totalorder %v767_v21, %v768_v11  ;;  %vm778_vm11 = vcmp.lt.s32.totalorder %v767_v21, %v774_v12 }
  0x2b   :  { %v102_v4 = vld [vmem:[%s2515_s0 + $0x1f0] sm:$0xff]  ;;  %v103_v5 = vld [vmem:[%s2515_s0 + $0x1f8] sm:$0xff]  ;;  %vm780_vm6 = vmand %vm770_vm4, %vm776_vm5 }
  0x2c   :  { %1523 = vmatmul.mubr.msk.f32.gmra.mrb[16].mxu0 %vm115_vm1, %v57_v23  ;;  %1308 = vmatprep.mubr.msk.f32.mxu1 %vm780_vm6, %v1870_v13  ;;  %vm2211_vm9 = vmand %vm769_vm7, %vm775_vm8  ;;  %v2218_v15 = vld [vmem:[%s2517_s2] ss:$0 sm:$0xff] }
  0x2d   :  { %1525 = vmatprep.mubr.msk.f32.mxu0 %vm115_vm1, %v58_v24  ;;  %v766_v24 = vadd.s32 256, %v764_v8  ;;  %vm2226_vm12 = vmand %vm772_vm10, %vm778_vm11 }
  0x2f   :  { %vm771_vm13 = vcmp.ge.s32.totalorder %v766_v24, %v768_v11  ;;  %vm777_vm14 = vcmp.lt.s32.totalorder %v766_v24, %v774_v12 }
  0x30   :  { %1526 = vmatmul.mubr.msk.f32.gmra.mrb[18].mxu0 %vm115_vm1, %v59_v25  ;;  %vm2230_vm15 = vmand %vm771_vm13, %vm777_vm14 }
  0x31   :  { %1528 = vmatprep.mubr.msk.f32.mxu0 %vm115_vm1, %v60_v26 }
  0x34   :  { %1529 = vmatmul.mubr.msk.f32.gmra.mrb[20].mxu0 %vm115_vm1, %v61_v27 }
  0x35   :  { %1531 = vmatprep.mubr.msk.f32.mxu0 %vm115_vm1, %v62_v28 }
  0x38   :  { %1532 = vmatmul.mubr.msk.f32.gmra.mrb[22].mxu0 %vm115_vm1, %v63_v29 }
  0x39   :  { %1534 = vmatprep.mubr.msk.f32.mxu0 %vm115_vm1, %v64_v30 }
  0x3c   :  { %1535 = vmatmul.mubr.msk.f32.gmra.mrb[24].mxu0 %vm115_vm1, %v65_v31 }
  0x3d   :  { %1537 = vmatprep.mubr.msk.f32.mxu0 %vm115_vm1, %v66_v32 }
  0x40   :  { %1538 = vmatmul.mubr.msk.f32.gmra.mrb[26].mxu0 %vm115_vm1, %v67_v33 }
  0x41   :  { %1540 = vmatprep.mubr.msk.f32.mxu0 %vm115_vm1, %v68_v34 }
  0x44   :  { %1541 = vmatmul.mubr.msk.f32.gmra.mrb[28].mxu0 %vm115_vm1, %v69_v35 }
  0x45   :  { %1543 = vmatprep.mubr.msk.f32.mxu0 %vm115_vm1, %v70_v36 }
  0x48   :  { %1544 = vmatmul.mubr.msk.f32.gmra.mrb[30].mxu0 %vm115_vm1, %v71_v37 }
  0x49   :  { %1546 = vmatprep.mubr.msk.f32.mxu0 %vm115_vm1, %v72_v38 }
  0x4c   :  { %1547 = vmatmul.mubr.msk.f32.gmra.mrb[32].mxu0 %vm115_vm1, %v73_v39 }
  0x4d   :  { %1549 = vmatprep.mubr.msk.f32.mxu0 %vm115_vm1, %v74_v40 }
  0x50   :  { %1550 = vmatmul.mubr.msk.f32.gmra.mrb[34].mxu0 %vm115_vm1, %v75_v41 }
  0x51   :  { %1552 = vmatprep.mubr.msk.f32.mxu0 %vm115_vm1, %v76_v42 }
  0x54   :  { %1553 = vmatmul.mubr.msk.f32.gmra.mrb[36].mxu0 %vm115_vm1, %v77_v43 }
  0x55   :  { %1555 = vmatprep.mubr.msk.f32.mxu0 %vm115_vm1, %v78_v44 }
  0x58   :  { %1556 = vmatmul.mubr.msk.f32.gmra.mrb[38].mxu0 %vm115_vm1, %v79_v45 }
  0x59   :  { %1558 = vmatprep.mubr.msk.f32.mxu0 %vm115_vm1, %v80_v46 }
  0x5c   :  { %1559 = vmatmul.mubr.msk.f32.gmra.mrb[40].mxu0 %vm115_vm1, %v81_v47 }
  0x5d   :  { %1561 = vmatprep.mubr.msk.f32.mxu0 %vm115_vm1, %v82_v48 }
  0x60   :  { %1562 = vmatmul.mubr.msk.f32.gmra.mrb[42].mxu0 %vm115_vm1, %v83_v49 }
  0x61   :  { %1564 = vmatprep.mubr.msk.f32.mxu0 %vm115_vm1, %v84_v50 }
  0x64   :  { %1565 = vmatmul.mubr.msk.f32.gmra.mrb[44].mxu0 %vm115_vm1, %v85_v51 }
  0x65   :  { %1567 = vmatprep.mubr.msk.f32.mxu0 %vm115_vm1, %v86_v52 }
  0x68   :  { %1568 = vmatmul.mubr.msk.f32.gmra.mrb[46].mxu0 %vm115_vm1, %v87_v53 }
  0x69   :  { %1570 = vmatprep.mubr.msk.f32.mxu0 %vm115_vm1, %v88_v54 }
  0x6c   :  { %1571 = vmatmul.mubr.msk.f32.gmra.mrb[48].mxu0 %vm115_vm1, %v89_v55 }
  0x6d   :  { %1573 = vmatprep.mubr.msk.f32.mxu0 %vm115_vm1, %v90_v56 }
  0x70   :  { %1574 = vmatmul.mubr.msk.f32.gmra.mrb[50].mxu0 %vm115_vm1, %v91_v57 }
  0x71   :  { %1576 = vmatprep.mubr.msk.f32.mxu0 %vm115_vm1, %v92_v58 }
  0x74   :  { %1577 = vmatmul.mubr.msk.f32.gmra.mrb[52].mxu0 %vm115_vm1, %v93_v59 }
  0x75   :  { %1579 = vmatprep.mubr.msk.f32.mxu0 %vm115_vm1, %v94_v60 }
  0x78   :  { %1580 = vmatmul.mubr.msk.f32.gmra.mrb[54].mxu0 %vm115_vm1, %v95_v61 }
  0x79   :  { %1582 = vmatprep.mubr.msk.f32.mxu0 %vm115_vm1, %v96_v62 }
  0x7c   :  { %1583 = vmatmul.mubr.msk.f32.gmra.mrb[56].mxu0 %vm115_vm1, %v97_v63 }
  0x7d   :  { %1585 = vmatprep.mubr.msk.f32.mxu0 %vm115_vm1, %v98_v0 }
  0x80   :  { %1586 = vmatmul.mubr.msk.f32.gmra.mrb[58].mxu0 %vm115_vm1, %v99_v1 }
  0x81   :  { %1588 = vmatprep.mubr.msk.f32.mxu0 %vm115_vm1, %v100_v2 }
  0x84   :  { %1589 = vmatmul.mubr.msk.f32.gmra.mrb[60].mxu0 %vm115_vm1, %v101_v3 }
  0x85   :  { %1591 = vmatprep.mubr.msk.f32.mxu0 %vm115_vm1, %v102_v4 }
  0x88   :  { %1592 = vmatmul.mubr.msk.f32.gmra.mrb[62].mxu0 %vm115_vm1, %v103_v5  ;;  %vm1030_vm1 = vcmask 64512  }
  0xdf   :  { %v1500_v16 = vpop.f32.mrb[0].mxu0 }
  0xe0   :  { %v384_v17 = vadd.f32 %v1500_v16, %v2218_v15  ;;  %v378_v18 = vpop.f32.mrb[1].mxu0 }
  0xe1   :  { %v379_v19 = vadd.f32 %v2218_v15, %v378_v18 }
  0xe2   :  { %v698_v20 = vmax.f32 %v384_v17, 0.0 }
  0xe3   :  { %v697_v22 = vmax.f32 %v379_v19, 0.0  ;;  %v1503_v23 = vpop.f32.mrb[2].mxu0 }
  0xe4   :  { %v394_v25 = vadd.f32 %v1503_v23, %v2218_v15  ;;  %v388_v26 = vpop.f32.mrb[3].mxu0 }
  0xe5   :  { %v389_v27 = vadd.f32 %v2218_v15, %v388_v26  ;;  %v2224_v28 = vpack.c.bf16 %v698_v20, %v697_v22 }
  0xe6   :  { %v700_v30 = vmax.f32 %v394_v25, 0.0 }
  0xe7   :  { %v699_v32 = vmax.f32 %v389_v27, 0.0  ;;  %v1506_v33 = vpop.f32.mrb[4].mxu0 }
  0xe8   :  { %v404_v34 = vadd.f32 %v1506_v33, %v2218_v15  ;;  %v398_v35 = vpop.f32.mrb[5].mxu0 }
  0xe9   :  { %v2235_v36 = vpack.c.bf16 %v700_v30, %v699_v32  ;;  %v399_v37 = vadd.f32 %v2218_v15, %v398_v35 }
  0xea   :  { %v702_v38 = vmax.f32 %v404_v34, 0.0 }
  0xeb   :  { %v701_v39 = vmax.f32 %v399_v37, 0.0  ;;  %v1509_v40 = vpop.f32.mrb[6].mxu0 }
  0xec   :  { %v414_v41 = vadd.f32 %v1509_v40, %v2218_v15  ;;  %v408_v42 = vpop.f32.mrb[7].mxu0 }
  0xed   :  { %v2239_v43 = vpack.c.bf16 %v702_v38, %v701_v39  ;;  %v409_v44 = vadd.f32 %v2218_v15, %v408_v42 }
  0xee   :  { %v704_v45 = vmax.f32 %v414_v41, 0.0 }
  0xef   :  { %v703_v46 = vmax.f32 %v409_v44, 0.0  ;;  %v1512_v47 = vpop.f32.mrb[8].mxu0 }
  0xf0   :  { %v424_v48 = vadd.f32 %v1512_v47, %v2218_v15  ;;  %v418_v49 = vpop.f32.mrb[9].mxu0 }
  0xf1   :  { %v2243_v50 = vpack.c.bf16 %v704_v45, %v703_v46  ;;  %v419_v51 = vadd.f32 %v2218_v15, %v418_v49 }
  0xf2   :  { %v706_v52 = vmax.f32 %v424_v48, 0.0 }
  0xf3   :  { %v705_v53 = vmax.f32 %v419_v51, 0.0  ;;  %v1515_v54 = vpop.f32.mrb[10].mxu0 }
  0xf4   :  { %v434_v55 = vadd.f32 %v1515_v54, %v2218_v15  ;;  %v428_v56 = vpop.f32.mrb[11].mxu0 }
  0xf5   :  { %v2247_v57 = vpack.c.bf16 %v706_v52, %v705_v53  ;;  %v429_v58 = vadd.f32 %v2218_v15, %v428_v56 }
  0xf6   :  { %v708_v59 = vmax.f32 %v434_v55, 0.0 }
  0xf7   :  { %v707_v60 = vmax.f32 %v429_v58, 0.0  ;;  %v1518_v61 = vpop.f32.mrb[12].mxu0 }
  0xf8   :  { %v444_v62 = vadd.f32 %v1518_v61, %v2218_v15  ;;  %v438_v63 = vpop.f32.mrb[13].mxu0 }
  0xf9   :  { %v2251_v0 = vpack.c.bf16 %v708_v59, %v707_v60  ;;  %v439_v1 = vadd.f32 %v2218_v15, %v438_v63 }
  0xfa   :  { %v710_v2 = vmax.f32 %v444_v62, 0.0 }
  0xfb   :  { %v709_v3 = vmax.f32 %v439_v1, 0.0  ;;  %v1521_v4 = vpop.f32.mrb[14].mxu0 }
  0xfc   :  { %v454_v5 = vadd.f32 %v1521_v4, %v2218_v15  ;;  %v448_v6 = vpop.f32.mrb[15].mxu0 }
  0xfd   :  { %v2255_v7 = vpack.c.bf16 %v710_v2, %v709_v3  ;;  %v449_v8 = vadd.f32 %v2218_v15, %v448_v6 }
  0xfe   :  { %v712_v9 = vmax.f32 %v454_v5, 0.0 }
  0xff   :  { %v711_v10 = vmax.f32 %v449_v8, 0.0  ;;  %v1524_v11 = vpop.f32.mrb[16].mxu0 }
 0x100   :  { %v464_v12 = vadd.f32 %v1524_v11, %v2218_v15  ;;  %v458_v16 = vpop.f32.mrb[17].mxu0 }
 0x101   :  { %v2259_v17 = vpack.c.bf16 %v712_v9, %v711_v10  ;;  %v459_v18 = vadd.f32 %v2218_v15, %v458_v16 }
 0x102   :  { %v714_v19 = vmax.f32 %v464_v12, 0.0 }
 0x103   :  { %v713_v20 = vmax.f32 %v459_v18, 0.0  ;;  %v1527_v21 = vpop.f32.mrb[18].mxu0 }
 0x104   :  { %v474_v22 = vadd.f32 %v1527_v21, %v2218_v15  ;;  %v468_v23 = vpop.f32.mrb[19].mxu0 }
 0x105   :  { %v469_v24 = vadd.f32 %v2218_v15, %v468_v23  ;;  %v1679_v25 = vpack.c.bf16 %v714_v19, %v713_v20 }
 0x106   :  { %v716_v26 = vmax.f32 %v474_v22, 0.0 }
 0x107   :  { %v715_v27 = vmax.f32 %v469_v24, 0.0  ;;  %v1530_v30 = vpop.f32.mrb[20].mxu0  ;;  %1680 = vmatprep.subr.bf16.mxu1 %v1679_v25 }
 0x108   :  { %v484_v32 = vadd.f32 %v1530_v30, %v2218_v15  ;;  %v478_v33 = vpop.f32.mrb[21].mxu0  ;;  %1682 = vmatpush3.bf16.msra.mxu1 %v2224_v28 }
 0x109   :  { %v1683_v34 = vpack.c.bf16 %v716_v26, %v715_v27  ;;  %v479_v35 = vadd.f32 %v2218_v15, %v478_v33 }
 0x10a   :  { %v718_v37 = vmax.f32 %v484_v32, 0.0 }
 0x10b   :  { %v717_v38 = vmax.f32 %v479_v35, 0.0  ;;  %v1533_v39 = vpop.f32.mrb[22].mxu0  ;;  %1684 = vmatprep.subr.bf16.mxu1 %v1683_v34 }
 0x10c   :  { %v494_v40 = vadd.f32 %v1533_v39, %v2218_v15  ;;  %v488_v41 = vpop.f32.mrb[23].mxu0  ;;  %1686 = vmatpush3.bf16.msra.mxu1 %v2235_v36 }
 0x10d   :  { %v1687_v42 = vpack.c.bf16 %v718_v37, %v717_v38  ;;  %v489_v44 = vadd.f32 %v2218_v15, %v488_v41 }
 0x10e   :  { %v720_v45 = vmax.f32 %v494_v40, 0.0 }
 0x10f   :  { %v719_v46 = vmax.f32 %v489_v44, 0.0  ;;  %v1536_v47 = vpop.f32.mrb[24].mxu0  ;;  %1688 = vmatprep.subr.bf16.mxu1 %v1687_v42 }
 0x110   :  { %v504_v28 = vadd.f32 %v1536_v47, %v2218_v15  ;;  %v498_v48 = vpop.f32.mrb[25].mxu0  ;;  %1690 = vmatpush3.bf16.msra.mxu1 %v2239_v43 }
 0x111   :  { %v1691_v49 = vpack.c.bf16 %v720_v45, %v719_v46  ;;  %v499_v51 = vadd.f32 %v2218_v15, %v498_v48 }
 0x112   :  { %v722_v52 = vmax.f32 %v504_v28, 0.0 }
 0x113   :  { %v721_v53 = vmax.f32 %v499_v51, 0.0  ;;  %v1539_v54 = vpop.f32.mrb[26].mxu0  ;;  %1692 = vmatprep.subr.bf16.mxu1 %v1691_v49 }
 0x114   :  { %v514_v36 = vadd.f32 %v1539_v54, %v2218_v15  ;;  %v508_v55 = vpop.f32.mrb[27].mxu0  ;;  %1694 = vmatpush3.bf16.msra.mxu1 %v2243_v50 }
 0x115   :  { %v1695_v56 = vpack.c.bf16 %v722_v52, %v721_v53  ;;  %v509_v58 = vadd.f32 %v2218_v15, %v508_v55 }
 0x116   :  { %v724_v59 = vmax.f32 %v514_v36, 0.0 }
 0x117   :  { %v723_v60 = vmax.f32 %v509_v58, 0.0  ;;  %v1542_v61 = vpop.f32.mrb[28].mxu0  ;;  %1696 = vmatprep.subr.bf16.mxu1 %v1695_v56 }
 0x118   :  { %v524_v43 = vadd.f32 %v1542_v61, %v2218_v15  ;;  %v518_v62 = vpop.f32.mrb[29].mxu0  ;;  %1698 = vmatpush3.bf16.msra.mxu1 %v2247_v57 }
 0x119   :  { %v1699_v63 = vpack.c.bf16 %v724_v59, %v723_v60  ;;  %v519_v1 = vadd.f32 %v2218_v15, %v518_v62 }
 0x11a   :  { %v726_v2 = vmax.f32 %v524_v43, 0.0 }
 0x11b   :  { %v725_v3 = vmax.f32 %v519_v1, 0.0  ;;  %v1545_v4 = vpop.f32.mrb[30].mxu0  ;;  %1700 = vmatprep.subr.bf16.mxu1 %v1699_v63 }
 0x11c   :  { %v534_v50 = vadd.f32 %v1545_v4, %v2218_v15  ;;  %v528_v5 = vpop.f32.mrb[31].mxu0  ;;  %1702 = vmatpush3.bf16.msra.mxu1 %v2251_v0 }
 0x11d   :  { %v1703_v6 = vpack.c.bf16 %v726_v2, %v725_v3  ;;  %v529_v8 = vadd.f32 %v2218_v15, %v528_v5 }
 0x11e   :  { %v728_v9 = vmax.f32 %v534_v50, 0.0 }
 0x11f   :  { %v727_v10 = vmax.f32 %v529_v8, 0.0  ;;  %v1548_v11 = vpop.f32.mrb[32].mxu0  ;;  %1704 = vmatprep.subr.bf16.mxu1 %v1703_v6 }
 0x120   :  { %v544_v57 = vadd.f32 %v1548_v11, %v2218_v15  ;;  %v538_v12 = vpop.f32.mrb[33].mxu0  ;;  %1706 = vmatpush3.bf16.msra.mxu1 %v2255_v7 }
 0x121   :  { %v1707_v16 = vpack.c.bf16 %v728_v9, %v727_v10  ;;  %v539_v18 = vadd.f32 %v2218_v15, %v538_v12 }
 0x122   :  { %v730_v19 = vmax.f32 %v544_v57, 0.0 }
 0x123   :  { %v729_v20 = vmax.f32 %v539_v18, 0.0  ;;  %v1551_v21 = vpop.f32.mrb[34].mxu0  ;;  %1708 = vmatprep.subr.bf16.mxu1 %v1707_v16 }
 0x124   :  { %v554_v0 = vadd.f32 %v1551_v21, %v2218_v15  ;;  %v548_v22 = vpop.f32.mrb[35].mxu0  ;;  %1710 = vmatpush3.bf16.msra.mxu1 %v2259_v17 }
 0x125   :  { %v2287_v23 = vpack.c.bf16 %v730_v19, %v729_v20  ;;  %v549_v24 = vadd.f32 %v2218_v15, %v548_v22 }
 0x126   :  { %v732_v25 = vmax.f32 %v554_v0, 0.0 }
 0x127   :  { %v731_v26 = vmax.f32 %v549_v24, 0.0  ;;  %v1554_v27 = vpop.f32.mrb[36].mxu0  ;;  %1309 = vmatmul.mubr.msk.f32.vlgmr.msra.gmra.mrb[0].mxu1 %vm2211_vm9, %v1870_v13 }
 0x128   :  { %v564_v7 = vadd.f32 %v1554_v27, %v2218_v15  ;;  %v558_v30 = vpop.f32.mrb[37].mxu0  ;;  %1310 = vmatprep.mubr.msk.f32.mxu1 %vm2226_vm12, %v1870_v13 }
 0x129   :  { %v2297_v32 = vpack.c.bf16 %v732_v25, %v731_v26  ;;  %v559_v17 = vadd.f32 %v2218_v15, %v558_v30 }
 0x12a   :  { %v734_v33 = vmax.f32 %v564_v7, 0.0 }
 0x12b   :  { %v733_v34 = vmax.f32 %v559_v17, 0.0  ;;  %v1557_v35 = vpop.f32.mrb[38].mxu0 }
 0x12c   :  { %v574_v37 = vadd.f32 %v1557_v35, %v2218_v15  ;;  %v568_v38 = vpop.f32.mrb[39].mxu0 }
 0x12d   :  { %v2301_v39 = vpack.c.bf16 %v734_v33, %v733_v34  ;;  %v569_v14 = vadd.f32 %v2218_v15, %v568_v38 }
 0x12e   :  { %v736_v40 = vmax.f32 %v574_v37, 0.0 }
 0x12f   :  { %v735_v41 = vmax.f32 %v569_v14, 0.0  ;;  %v1560_v42 = vpop.f32.mrb[40].mxu0 }
 0x130   :  { %v584_v29 = vadd.f32 %v1560_v42, %v2218_v15  ;;  %v578_v44 = vpop.f32.mrb[41].mxu0 }
 0x131   :  { %v2305_v45 = vpack.c.bf16 %v736_v40, %v735_v41  ;;  %v579_v46 = vadd.f32 %v2218_v15, %v578_v44 }
 0x132   :  { %v738_v47 = vmax.f32 %v584_v29, 0.0 }
 0x133   :  { %v737_v28 = vmax.f32 %v579_v46, 0.0  ;;  %v1563_v48 = vpop.f32.mrb[42].mxu0 }
 0x134   :  { %v594_v49 = vadd.f32 %v1563_v48, %v2218_v15  ;;  %v588_v51 = vpop.f32.mrb[43].mxu0 }
 0x135   :  { %v2309_v52 = vpack.c.bf16 %v738_v47, %v737_v28  ;;  %v589_v53 = vadd.f32 %v2218_v15, %v588_v51 }
 0x136   :  { %v740_v54 = vmax.f32 %v594_v49, 0.0 }
 0x137   :  { %v739_v36 = vmax.f32 %v589_v53, 0.0  ;;  %v1566_v55 = vpop.f32.mrb[44].mxu0 }
 0x138   :  { %v604_v56 = vadd.f32 %v1566_v55, %v2218_v15  ;;  %v598_v58 = vpop.f32.mrb[45].mxu0 }
 0x139   :  { %v2313_v59 = vpack.c.bf16 %v740_v54, %v739_v36  ;;  %v599_v60 = vadd.f32 %v2218_v15, %v598_v58 }
 0x13a   :  { %v742_v61 = vmax.f32 %v604_v56, 0.0 }
 0x13b   :  { %v741_v43 = vmax.f32 %v599_v60, 0.0  ;;  %v1569_v62 = vpop.f32.mrb[46].mxu0 }
 0x13c   :  { %v614_v63 = vadd.f32 %v1569_v62, %v2218_v15  ;;  %v608_v1 = vpop.f32.mrb[47].mxu0 }
 0x13d   :  { %v2317_v2 = vpack.c.bf16 %v742_v61, %v741_v43  ;;  %v609_v3 = vadd.f32 %v2218_v15, %v608_v1 }
 0x13e   :  { %v744_v4 = vmax.f32 %v614_v63, 0.0 }
 0x13f   :  { %v743_v50 = vmax.f32 %v609_v3, 0.0  ;;  %v1572_v5 = vpop.f32.mrb[48].mxu0 }
 0x140   :  { %v624_v6 = vadd.f32 %v1572_v5, %v2218_v15  ;;  %v618_v8 = vpop.f32.mrb[49].mxu0  ;;  %v931_v5 = vld [vmem:[%s2518_s3 + $0x20] sm:$0xff] }
 0x141   :  { %v2321_v9 = vpack.c.bf16 %v744_v4, %v743_v50  ;;  %v619_v10 = vadd.f32 %v2218_v15, %v618_v8  ;;  %v1871_v4 = vmov 0.0|0.0  }
 0x142   :  { %v746_v11 = vmax.f32 %v624_v6, 0.0  ;;  %v932_v6 = vld [vmem:[%s2518_s3 + $0x28] sm:$0xff] }
 0x143   :  { %v745_v57 = vmax.f32 %v619_v10, 0.0  ;;  %v1575_v12 = vpop.f32.mrb[50].mxu0  ;;  %v1750_v8 = vpack.c.bf16 %v932_v6, %v931_v5  ;;  %v934_v10 = vld [vmem:[%s2518_s3 + $0x38] sm:$0xff] }
 0x144   :  { %v634_v16 = vadd.f32 %v1575_v12, %v2218_v15  ;;  %v628_v18 = vpop.f32.mrb[51].mxu0  ;;  %v936_v12 = vld [vmem:[%s2518_s3 + $0x48] sm:$0xff] }
 0x145   :  { %v1711_v19 = vpack.c.bf16 %v746_v11, %v745_v57  ;;  %v629_v20 = vadd.f32 %v2218_v15, %v628_v18  ;;  %v935_v57 = vld [vmem:[%s2518_s3 + $0x40] sm:$0xff]  ;;  %v937_v18 = vld [vmem:[%s2518_s3 + $0x50] sm:$0xff] }
 0x146   :  { %v748_v21 = vmax.f32 %v634_v16, 0.0  ;;  %v1756_v16 = vpack.c.bf16 %v936_v12, %v935_v57 }
 0x147   :  { %v747_v0 = vmax.f32 %v629_v20, 0.0  ;;  %v1578_v22 = vpop.f32.mrb[52].mxu0  ;;  %1712 = vmatprep.subr.bf16.mxu1 %v1711_v19  ;;  %v938_v19 = vld [vmem:[%s2518_s3 + $0x58] sm:$0xff] }
 0x148   :  { %v644_v24 = vadd.f32 %v1578_v22, %v2218_v15  ;;  %v638_v25 = vpop.f32.mrb[53].mxu0  ;;  %1714 = vmatpush3.bf16.msra.mxu1 %v2287_v23  ;;  %v1759_v20 = vpack.c.bf16 %v938_v19, %v937_v18 }
 0x149   :  { %v1715_v26 = vpack.c.bf16 %v748_v21, %v747_v0  ;;  %v639_v27 = vadd.f32 %v2218_v15, %v638_v25  ;;  %v939_v21 = vld [vmem:[%s2518_s3 + $0x60] sm:$0xff]  ;;  %v940_v0 = vld [vmem:[%s2518_s3 + $0x68] sm:$0xff]  ;;  %v942_v25 = vld [vmem:[%s2518_s3 + $0x78] sm:$0xff] }
 0x14a   :  { %v750_v7 = vmax.f32 %v644_v24, 0.0  ;;  %v1762_v22 = vpack.c.bf16 %v940_v0, %v939_v21  ;;  %v941_v24 = vld [vmem:[%s2518_s3 + $0x70] sm:$0xff] }
 0x14b   :  { %v749_v30 = vmax.f32 %v639_v27, 0.0  ;;  %v1581_v17 = vpop.f32.mrb[54].mxu0  ;;  %1716 = vmatprep.subr.bf16.mxu1 %v1715_v26  ;;  %v1765_v26 = vpack.c.bf16 %v942_v25, %v941_v24  ;;  %v1873_v27 = vmov 0.0  }
 0x14c   :  { %v654_v33 = vadd.f32 %v1581_v17, %v2218_v15  ;;  %v648_v34 = vpop.f32.mrb[55].mxu0  ;;  %1718 = vmatpush3.bf16.msra.mxu1 %v2297_v32 }
 0x14d   :  { %v1719_v35 = vpack.c.bf16 %v750_v7, %v749_v30  ;;  %v649_v37 = vadd.f32 %v2218_v15, %v648_v34 }
 0x14e   :  { %v752_v38 = vmax.f32 %v654_v33, 0.0 }
 0x14f   :  { %v751_v14 = vmax.f32 %v649_v37, 0.0  ;;  %v1584_v40 = vpop.f32.mrb[56].mxu0  ;;  %1720 = vmatprep.subr.bf16.mxu1 %v1719_v35 }
 0x150   :  { %v664_v23 = vadd.f32 %v1584_v40, %v2218_v15  ;;  %v658_v41 = vpop.f32.mrb[57].mxu0  ;;  %1722 = vmatpush3.bf16.msra.mxu1 %v2301_v39  ;;  %v1106_v40 = vld [vmem:[%s2523_s8 + $0x8] sm:$0xff] }
 0x151   :  { %v1723_v42 = vpack.c.bf16 %v752_v38, %v751_v14  ;;  %v659_v29 = vadd.f32 %v2218_v15, %v658_v41  ;;  %v1022_v38 = vld [vmem:[%s2521_s6] sm:$0xff] }
 0x152   :  { %v754_v44 = vmax.f32 %v664_v23, 0.0  ;;  %v1105_v14 = vld [vmem:[%s2523_s8] sm:$0xff] }
 0x153   :  { %v753_v46 = vmax.f32 %v659_v29, 0.0  ;;  %v1587_v47 = vpop.f32.mrb[58].mxu0  ;;  %1724 = vmatprep.subr.bf16.mxu1 %v1723_v42  ;;  %v1021_v23 = vld [vmem:[%s2520_s5] sm:$0x3]  ;;  %v1768_v41 = vpack.c.bf16 %v1106_v40, %v1105_v14  ;;  %v1107_v42 = vld [vmem:[%s2523_s8 + $0x10] sm:$0xff]  ;;  %v1108_v29 = vld [vmem:[%s2523_s8 + $0x18] sm:$0xff] }
 0x154   :  { %v674_v32 = vadd.f32 %v1587_v47, %v2218_v15  ;;  %v668_v28 = vpop.f32.mrb[59].mxu0  ;;  %1726 = vmatpush3.bf16.msra.mxu1 %v2305_v45  ;;  %v1110_v47 = vld [vmem:[%s2523_s8 + $0x28] sm:$0xff] }
 0x155   :  { %v1727_v48 = vpack.c.bf16 %v754_v44, %v753_v46  ;;  %v669_v49 = vadd.f32 %v2218_v15, %v668_v28  ;;  %v1771_v44 = vpack.c.bf16 %v1108_v29, %v1107_v42  ;;  %v1109_v46 = vld [vmem:[%s2523_s8 + $0x20] sm:$0xff]  ;;  %v1111_v28 = vld [vmem:[%s2523_s8 + $0x30] sm:$0xff] }
 0x156   :  { %v756_v51 = vmax.f32 %v674_v32, 0.0  ;;  %v1774_v32 = vpack.c.bf16 %v1110_v47, %v1109_v46 }
 0x157   :  { %v755_v53 = vmax.f32 %v669_v49, 0.0  ;;  %v1590_v54 = vpop.f32.mrb[60].mxu0  ;;  %1728 = vmatprep.subr.bf16.mxu1 %v1727_v48  ;;  %v1112_v48 = vld [vmem:[%s2523_s8 + $0x38] sm:$0xff] }
 0x158   :  { %v684_v39 = vadd.f32 %v1590_v54, %v2218_v15  ;;  %v678_v36 = vpop.f32.mrb[61].mxu0  ;;  %1730 = vmatpush3.bf16.msra.mxu1 %v2309_v52  ;;  %v1777_v49 = vpack.c.bf16 %v1112_v48, %v1111_v28 }
 0x159   :  { %v1731_v55 = vpack.c.bf16 %v756_v51, %v755_v53  ;;  %v679_v56 = vadd.f32 %v2218_v15, %v678_v36  ;;  %v1113_v51 = vld [vmem:[%s2523_s8 + $0x40] sm:$0xff]  ;;  %v1114_v53 = vld [vmem:[%s2523_s8 + $0x48] sm:$0xff]  ;;  %v1116_v36 = vld [vmem:[%s2523_s8 + $0x58] sm:$0xff] }
 0x15a   :  { %v758_v58 = vmax.f32 %v684_v39, 0.0  ;;  %v1780_v54 = vpack.c.bf16 %v1114_v53, %v1113_v51  ;;  %v1115_v39 = vld [vmem:[%s2523_s8 + $0x50] sm:$0xff] }
 0x15b   :  { %v757_v60 = vmax.f32 %v679_v56, 0.0  ;;  %v1593_v61 = vpop.f32.mrb[62].mxu0  ;;  %1732 = vmatprep.subr.bf16.mxu1 %v1731_v55  ;;  %v1783_v55 = vpack.c.bf16 %v1116_v36, %v1115_v39  ;;  %v1117_v56 = vld [vmem:[%s2523_s8 + $0x60] sm:$0xff] }
 0x15c   :  { %v694_v45 = vadd.f32 %v1593_v61, %v2218_v15  ;;  %v688_v43 = vpop.f32.mrb[63].mxu0  ;;  %1734 = vmatpush3.bf16.msra.mxu1 %v2313_v59  ;;  %v927_v59 = vld [vmem:[%s2518_s3] sm:$0xff]  ;;  %v1119_v61 = vld [vmem:[%s2523_s8 + $0x70] sm:$0xff] }
 0x15d   :  { %v1735_v62 = vpack.c.bf16 %v758_v58, %v757_v60  ;;  %v689_v63 = vadd.f32 %v2218_v15, %v688_v43  ;;  %v928_v15 = vld [vmem:[%s2518_s3 + $0x8] sm:$0xff] }
 0x15e   :  { %v760_v1 = vmax.f32 %v694_v45, 0.0  ;;  %v1744_v50 = vpack.c.bf16 %v928_v15, %v927_v59  ;;  %v1118_v58 = vld [vmem:[%s2523_s8 + $0x68] sm:$0xff]  ;;  %v1120_v45 = vld [vmem:[%s2523_s8 + $0x78] sm:$0xff]  ;;  %s1874_s8 = smov [#allocation4]  }
 0x15f   :  { %v759_v3 = vmax.f32 %v689_v63, 0.0  ;;  %1736 = vmatprep.subr.bf16.mxu1 %v1735_v62  ;;  %v1786_v60 = vpack.c.bf16 %v1118_v58, %v1117_v56  ;;  %v1789_v43 = vpack.c.bf16 %v1120_v45, %v1119_v61  ;;  %v1312_v62 = vld [vmem:[%s2519_s4] ss:$0 sm:$0xff]  ;;  %s1217_s27 = sshll.u32 %s1874_s8, 4  ;;  %s1218_s27 = int_to_ptr.vmem [resolvable:$true] %s1217_s27 }
 0x160   :  { %1738 = vmatpush3.bf16.msra.mxu1 %v2317_v2  ;;  %v929_v2 = vld [vmem:[%s2518_s3 + $0x10] sm:$0xff]  ;;  %s1799_s4 = scalar_lea.vmem %s1218_s27, 32  ;;  %p1804_p1 = scmp.lt.s32.totalorder %s1218_s27, %s1218_s27 }
 0x161   :  { %v1739_v52 = vpack.c.bf16 %v760_v1, %v759_v3  ;;  %p1800_p0 = scmp.ne.s32.totalorder %s1218_s27, %s1799_s4  ;;  %p1805_p2 = scmp.lt.s32.totalorder %s1799_s4, %s1799_s4 }
 0x163   :  { %1740 = vmatprep.subr.bf16.mxu1 %v1739_v52  ;;  %v1313_v52 = vld [vmem:[%s2522_s7] ss:$0 sm:$0xff]  ;;  %p1806_p3 = por %p1805_p2, %p1804_p1 }
 0x164   :  { %1742 = vmatpush3.bf16.msra.mxu1 %v2321_v9  ;;  %v933_v9 = vld [vmem:[%s2518_s3 + $0x30] sm:$0xff] }
 0x165   :  { %1743 = vmatprep.subr.bf16.mxu1 %v1871_v4  ;;  %v1753_v11 = vpack.c.bf16 %v934_v10, %v933_v9  ;;  %p1807_p4 = pnand %p1806_p3, %p1800_p0 }
 0x167   :  { %1311 = vmatmul.mubr.msk.f32.vlgmr.msra.gmra.mrb[2].mxu1 %vm2230_vm15, %v1870_v13  ;;  %v930_v13 = vld [vmem:[%s2518_s3 + $0x18] sm:$0xff] }
 0x168   :  { %1745 = vmatpush3.bf16.msra.mxu1 %v1744_v50  ;;  %v1747_v31 = vpack.c.bf16 %v930_v13, %v929_v2  ;;  %1626 = vmatprep.mubr.msk.f32.mxu1 %vm1872_vm0, %v1873_v27 }
 0x169   :  { %1746 = vmatprep.subr.bf16.mxu1 %v1871_v4 }
 0x16c   :  { %1748 = vmatpush3.bf16.msra.mxu1 %v1747_v31 }
 0x16d   :  { %1749 = vmatprep.subr.bf16.mxu1 %v1871_v4 }
 0x170   :  { %1751 = vmatpush3.bf16.msra.mxu1 %v1750_v8 }
 0x171   :  { %1752 = vmatprep.subr.bf16.mxu1 %v1871_v4 }
 0x174   :  { %1754 = vmatpush3.bf16.msra.mxu1 %v1753_v11 }
 0x175   :  { %1755 = vmatprep.subr.bf16.mxu1 %v1871_v4 }
 0x178   :  { %1757 = vmatpush3.bf16.msra.mxu1 %v1756_v16 }
 0x179   :  { %1758 = vmatprep.subr.bf16.mxu1 %v1871_v4 }
 0x17c   :  { %1760 = vmatpush3.bf16.msra.mxu1 %v1759_v20 }
 0x17d   :  { %1761 = vmatprep.subr.bf16.mxu1 %v1871_v4 }
 0x180   :  { %1763 = vmatpush3.bf16.msra.mxu1 %v1762_v22 }
 0x181   :  { %1764 = vmatprep.subr.bf16.mxu1 %v1871_v4 }
 0x184   :  { %1766 = vmatpush3.bf16.msra.mxu1 %v1765_v26 }
 0x185   :  { %1629 = vmatprep.subr.mxu1 %v1873_v27 }
 0x1fa   :  { %v1416_v7 = vpop.f32.mrb[0].mxu1 }
 0x1fb   :  { %v1417_v30 = vpop.f32.mrb[1].mxu1 }
 0x1fc   :  { %v1418_v17 = vadd.f32 %v1417_v30, %v1416_v7 }
 0x23a   :  { %v1451_v33 = vpop.f32.mrb[2].mxu1 }
 0x23b   :  { %v1452_v34 = vpop.f32.mrb[3].mxu1 }
 0x23c   :  { %v1453_v35 = vadd.f32 %v1452_v34, %v1451_v33 }
 0x23e   :  { %v924_v37 = vadd.f32 %v1453_v35, %v1418_v17 }
 0x240   :  { %1627 = vmatmul.mubr.f32.vlgmr.msra.gmra.mrb[4].mxu1 %v924_v37 }
 0x241   :  { %1630 = vmatpush3.msra.mxu1 %v1022_v38  ;;  %1631 = vmatprep.mubr.msk.f32.mxu1 %vm1872_vm0, %v1873_v27 }
 0x242   :  { %1767 = vmatprep.subr.bf16.mxu1 %v1871_v4 }
 0x244   :  { %1632 = vmatmul.mubr.msk.f32.vlgmr.msra.gmra.mrb[6].mxu1 %vm1030_vm1, %v1021_v23 }
 0x245   :  { %1769 = vmatpush3.bf16.msra.mxu1 %v1768_v41  ;;  %1666 = vmatprep.mubr.msk.f32.mxu1 %vm1872_vm0, %v1873_v27 }
 0x246   :  { %1770 = vmatprep.subr.bf16.mxu1 %v1871_v4 }
 0x249   :  { %1772 = vmatpush3.bf16.msra.mxu1 %v1771_v44 }
 0x24a   :  { %1773 = vmatprep.subr.bf16.mxu1 %v1871_v4 }
 0x24d   :  { %1775 = vmatpush3.bf16.msra.mxu1 %v1774_v32 }
 0x24e   :  { %1776 = vmatprep.subr.bf16.mxu1 %v1871_v4 }
 0x251   :  { %1778 = vmatpush3.bf16.msra.mxu1 %v1777_v49 }
 0x252   :  { %1779 = vmatprep.subr.bf16.mxu1 %v1871_v4 }
 0x255   :  { %1781 = vmatpush3.bf16.msra.mxu1 %v1780_v54 }
 0x256   :  { %1782 = vmatprep.subr.bf16.mxu1 %v1871_v4 }
 0x259   :  { %1784 = vmatpush3.bf16.msra.mxu1 %v1783_v55 }
 0x25a   :  { %1785 = vmatprep.subr.bf16.mxu1 %v1871_v4 }
 0x25d   :  { %1787 = vmatpush3.bf16.msra.mxu1 %v1786_v60 }
 0x25e   :  { %1788 = vmatprep.subr.bf16.mxu1 %v1871_v4 }
 0x261   :  { %1790 = vmatpush3.bf16.msra.mxu1 %v1789_v43 }
 0x313   :  { %v1016_v63 = vpop.f32.mrb[4].mxu1 }
 0x314   :  { %v1017_v1 = vadd.f32 %v1312_v62, %v1016_v63  ;;  %v1628_v3 = vpop.f32.mrb[5].mxu1 }
 0x316   :  { %1020 = vst [vmem:[#allocation2] sm:$0x3] %v1017_v1 }
 0x317   :  { %v1100_v59 = vpop.f32.mrb[6].mxu1 }
 0x318   :  { %v1101_v15 = vadd.f32 %v1313_v52, %v1100_v59  ;;  %v1633_v2 = vpop.f32.mrb[7].mxu1 }
 0x31a   :  { %v1104_v4 = vmax.f32 %v1101_v15, 0.0 }
 0x31c   :  { %1199 = vst [vmem:[#allocation4] sm:$0x3] %v1104_v4  ;;  %1667 = vmatmul.mubr.f32.vlgmr.msra.gmra.mrb[8].mxu1 %v1104_v4 }
 0x31d   :  { %1810 = shalt.err (!%p1807_p4)
}
 0x31e   :  { %s1811_s13 = scalar_lea.hbm %s2526_s11, 32 }
 0x31f   :  { %p1812_p5 = scmp.ne.s32.totalorder %s2526_s11, %s1811_s13  ;;  %p1815_p6 = scmp.lt.u32.totalorder %s1811_s13, %s2526_s11 }
 0x321   :  { %p1817_p7 = pnand %p1815_p6, %p1812_p5 }
 0x323   :  { %1820 = shalt.err (!%p1817_p7)
}
 0x324   :  { %1220 = dma.vmem_to_hbm [thread:$0]  %s1218_s27, 32, %s2526_s11, [#allocation5]  }
 0x325   :  { %s1821_s3 = scalar_lea.vmem %s1208_s29, 32  ;;  %p1826_p9 = scmp.lt.s32.totalorder %s1208_s29, %s1208_s29 }
 0x326   :  { %p1822_p8 = scmp.ne.s32.totalorder %s1208_s29, %s1821_s3  ;;  %p1827_p10 = scmp.lt.s32.totalorder %s1821_s3, %s1821_s3 }
 0x328   :  { %p1828_p11 = por %p1827_p10, %p1826_p9 }
 0x32a   :  { %p1829_p12 = pnand %p1828_p11, %p1822_p8 }
 0x32c   :  { %1832 = shalt.err (!%p1829_p12)
}
 0x32d   :  { %s1833_s21 = scalar_lea.hbm %s2525_s10, 32 }
 0x32e   :  { %p1834_p13 = scmp.ne.s32.totalorder %s2525_s10, %s1833_s21  ;;  %p1837_p0 = scmp.lt.u32.totalorder %s1833_s21, %s2525_s10 }
 0x330   :  { %p1839_p1 = pnand %p1837_p0, %p1834_p13 }
 0x332   :  { %1842 = shalt.err (!%p1839_p1)
}
 0x333   :  { %1210 = dma.vmem_to_hbm [thread:$0]  %s1208_s29, 32, %s2525_s10, [#allocation3]   ;;  %v1315_v50 = vld [vmem:[%s2524_s9] ss:$0 sm:$0xff] }
 0x334   :  { %s1876_s25 = smov [#allocation6]  }
 0x335   :  { %s1227_s26 = sshll.u32 %s1876_s25, 4  ;;  %s1228_s26 = int_to_ptr.vmem [resolvable:$true] %s1227_s26 }
 0x336   :  { %s1843_s8 = scalar_lea.vmem %s1228_s26, 32  ;;  %p1848_p3 = scmp.lt.s32.totalorder %s1228_s26, %s1228_s26 }
 0x337   :  { %p1844_p2 = scmp.ne.s32.totalorder %s1228_s26, %s1843_s8  ;;  %p1849_p4 = scmp.lt.s32.totalorder %s1843_s8, %s1843_s8 }
 0x339   :  { %p1850_p5 = por %p1849_p4, %p1848_p3 }
 0x33b   :  { %p1851_p6 = pnand %p1850_p5, %p1844_p2 }
 0x3ef   :  { %v1194_v13 = vpop.f32.mrb[8].mxu1 }
 0x3f0   :  { %v1195_v31 = vadd.f32 %v1315_v50, %v1194_v13  ;;  %v1668_v5 = vpop.f32.mrb[9].mxu1 }
 0x3f2   :  { %v1198_v6 = vmax.f32 %v1195_v31, 0.0 }
 0x3f4   :  { %1200 = vst [vmem:[#allocation6] sm:$0x3] %v1198_v6 }
 0x3f5   :  { %1854 = shalt.err (!%p1851_p6)
}
 0x3f6   :  { %s1855_s28 = scalar_lea.hbm %s2527_s12, 32 }
 0x3f7   :  { %p1856_p7 = scmp.ne.s32.totalorder %s2527_s12, %s1855_s28  ;;  %p1859_p8 = scmp.lt.u32.totalorder %s1855_s28, %s2527_s12 }
 0x3f9   :  { %p1861_p9 = pnand %p1859_p8, %p1856_p7 }
 0x3fb   :  { %1864 = shalt.err (!%p1861_p9)
}
 0x3fc   :  { %1230 = dma.vmem_to_hbm [thread:$0]  %s1228_s26, 32, %s2527_s12, [#allocation5]  }
 0x3fd   :  { %1865 = dma.done.wait [#allocation3], 32  }
 0x3fe   :  { %1866 = vsyncadd [#allocation3], 4294967264 }
 0x3ff   :  { %1867 = dma.done.wait [#allocation5], 64  }
 0x400   :  { %1868 = vsyncadd [#allocation5], 4294967232 }
 0x401   :  { %1240 = vsyncpa [#allocation3], 1 }
 0x402   :  { %1241 = vsyncpa [#allocation5], 1 }

</bundles_post_ra>
